<compile_context>
chip_gen: v5e
topology: v5e:2x2
jax: 0.10.0
libtpu: 0.0.40
codegen_flags: <defaults>
</compile_context>

<pallas_src>
import math

import jax
import jax.numpy as jnp
from jax.experimental import pallas as pl
from jax.experimental.pallas import tpu as pltpu

# ----------------------------- problem sizes ------------------------------
SEQ_LEN = 8          # L
BATCH = 2            # N
EMBED_DIM = 32       # E  (divisible by num_heads)
NUM_HEADS = 4        # H
HEAD_DIM = EMBED_DIM // NUM_HEADS
LN_EPS = 1e-5


# ------------------------------ Pallas kernel -----------------------------
def mha_kernel(x_ref, wqkv_ref, wo_ref, prm_ref, o_ref):
    """One grid step = one batch element.

    x_ref    : (L, E)   tokens of this batch element
    wqkv_ref : (E, 3E)  pre-transposed fused in_proj (Q block pre-scaled by 1/sqrt(d))
    wo_ref   : (E, E)   pre-transposed out_proj
    prm_ref  : (2, 3E)  row0 = fused in_proj bias, row1 = [bo | gamma | beta]
    o_ref    : (L, E)
    """
    L, E, H, d = SEQ_LEN, EMBED_DIM, NUM_HEADS, HEAD_DIM

    x = x_ref[...].astype(jnp.float32)                                   # (L, E)

    prm = prm_ref[...]                                                   # (2, 3E)
    b_qkv = prm[0:1, :]                                                  # (1, 3E)
    bo = prm[1:2, 0 * E:1 * E]                                           # (1, E)
    gamma = prm[1:2, 1 * E:2 * E]                                        # (1, E)
    beta = prm[1:2, 2 * E:3 * E]                                         # (1, E)

    # Fused QKV projection: one (L,E)@(E,3E) matmul, no in-kernel weight transposes.
    qkv = (jnp.dot(x, wqkv_ref[...], preferred_element_type=jnp.float32)
           + b_qkv)                                                      # (L, 3E)

    # Head split: one lane slice + one reshape per block; heads become the
    # leading (batch) dim so both attention matmuls are clean batched dot_generals.
    def split_heads(block):
        blk = qkv[:, block * E:(block + 1) * E].reshape(L, H, d)
        return jnp.transpose(blk, (1, 0, 2))                             # (H, L, d)

    qh = split_heads(0)
    kh = split_heads(1)
    vh = split_heads(2)

    # Attention (scale already folded into the Q weights).
    s = jnp.einsum("hqd,hkd->hqk", qh, kh,
                   preferred_element_type=jnp.float32)                   # (H, L, L)
    s = s - jnp.max(s, axis=-1, keepdims=True)
    p = jnp.exp(s)
    # Exact divide: softmax exactness matters and the EUP is not the bottleneck here.
    p = p / jnp.sum(p, axis=-1, keepdims=True)
    ctx = jnp.einsum("hqk,hkd->hqd", p, vh,
                     preferred_element_type=jnp.float32)                 # (H, L, d)

    # Merge heads with one relayout, then a single (L,E)@(E,E) output projection.
    merged = jnp.transpose(ctx, (1, 0, 2)).reshape(L, E)
    attended = (jnp.dot(merged, wo_ref[...], preferred_element_type=jnp.float32)
                + bo)                                                    # (L, E)

    # Dropout(p=0.1) is identity in eval mode (deterministic forward).
    # TODO(synk): training-mode dropout mask (pltpu.prng_*) not implemented.

    # Residual + LayerNorm over the embedding dim.
    z = x + attended
    mu = jnp.mean(z, axis=-1, keepdims=True)
    var = jnp.mean((z - mu) * (z - mu), axis=-1, keepdims=True)
    y = (z - mu) * jax.lax.rsqrt(var + LN_EPS) * gamma + beta

    o_ref[...] = y.astype(o_ref.dtype)


# -------------------------------- wrapper ----------------------------------
def pack_params(params):
    """One-time packing: fuse/pre-transpose weights, fold 1/sqrt(d) into Q,
    and pack the four tiny bias/LayerNorm vectors into a single (2, 3E) buffer."""
    scale = 1.0 / math.sqrt(HEAD_DIM)
    w_qkv = jnp.concatenate(
        [params["wq"].T * scale, params["wk"].T, params["wv"].T], axis=1)   # (E, 3E)
    b_qkv = jnp.concatenate(
        [params["bq"] * scale, params["bk"], params["bv"]], axis=1)         # (1, 3E)
    ln_row = jnp.concatenate(
        [params["bo"], params["gamma"], params["beta"]], axis=1)            # (1, 3E)
    small = jnp.concatenate([b_qkv, ln_row], axis=0)                        # (2, 3E)
    # TODO(synk): at realistic sizes store w_qkv / wo_t in bfloat16 for MXU-native matmuls.
    return {"w_qkv": w_qkv, "wo_t": params["wo"].T, "small": small}


@jax.jit
def multi_head_attention(x_lne, packed):
    """x_lne: (L, N, E) float32 (PyTorch batch_first=False convention)."""
    L, N, E = x_lne.shape
    H, d = NUM_HEADS, HEAD_DIM

    # (L, N, E) -> (N, L, E) -> (N*L, E): each batch element is a contiguous (L, E) tile.
    x2d = jnp.transpose(x_lne, (1, 0, 2)).reshape(N * L, E)

    flops = N * (2 * L * E * 3 * E + 2 * (2 * H * L * L * d) + 2 * L * E * E)
    transcendentals = N * (H * L * L + L)                    # exp + rsqrt
    bytes_accessed = 4 * (2 * N * L * E + E * 3 * E + E * E + 2 * 3 * E)

    out2d = pl.pallas_call(
        mha_kernel,
        out_shape=jax.ShapeDtypeStruct((N * L, E), x_lne.dtype),
        grid=(N,),
        in_specs=[
            pl.BlockSpec((L, E), lambda n: (n, 0)),          # x tile for batch n
            pl.BlockSpec((E, 3 * E), lambda n: (0, 0)),      # fused in_proj (pre-transposed)
            pl.BlockSpec((E, E), lambda n: (0, 0)),          # out_proj (pre-transposed)
            pl.BlockSpec((2, 3 * E), lambda n: (0, 0)),      # packed biases + LN params (one DMA)
        ],
        out_specs=pl.BlockSpec((L, E), lambda n: (n, 0)),
        compiler_params=pltpu.CompilerParams(
            dimension_semantics=("parallel",)),              # batch-parallel (v7x: 2 TCs)
        cost_estimate=pl.CostEstimate(
            flops=flops, transcendentals=transcendentals,
            bytes_accessed=bytes_accessed),
    )(x2d, packed["w_qkv"], packed["wo_t"], packed["small"])

    return jnp.transpose(out2d.reshape(N, L, E), (1, 0, 2))  # back to (L, N, E)


# ------------------------- pure-JAX reference ------------------------------
def reference(x_lne, params):
    x = jnp.transpose(x_lne, (1, 0, 2)).astype(jnp.float32)  # (N, L, E)
    q = x @ params["wq"].T + params["bq"]
    k = x @ params["wk"].T + params["bk"]
    v = x @ params["wv"].T + params["bv"]

    def split(t):  # (N, L, E) -> (N, H, L, d)
        N, L, E = t.shape
        return jnp.transpose(t.reshape(N, L, NUM_HEADS, HEAD_DIM), (0, 2, 1, 3))

    qh, kh, vh = split(q), split(k), split(v)
    s = jnp.einsum("nhld,nhmd->nhlm", qh, kh) / math.sqrt(HEAD_DIM)
    p = jax.nn.softmax(s, axis=-1)
    o = jnp.einsum("nhlm,nhmd->nhld", p, vh)
    o = jnp.transpose(o, (0, 2, 1, 3)).reshape(x.shape)
    attended = o @ params["wo"].T + params["bo"]
    z = x + attended
    mu = jnp.mean(z, axis=-1, keepdims=True)
    var = jnp.mean((z - mu) ** 2, axis=-1, keepdims=True)
    y = (z - mu) / jnp.sqrt(var + LN_EPS) * params["gamma"] + params["beta"]
    return jnp.transpose(y, (1, 0, 2))


# ---------------------------------- main ------------------------------------
if __name__ == "__main__":
    key = jax.random.PRNGKey(0)
    keys = jax.random.split(key, 12)

    E = EMBED_DIM
    scale = 1.0 / math.sqrt(E)
    params = {
        "wq": jax.random.normal(keys[0], (E, E), jnp.float32) * scale,
        "wk": jax.random.normal(keys[1], (E, E), jnp.float32) * scale,
        "wv": jax.random.normal(keys[2], (E, E), jnp.float32) * scale,
        "bq": jax.random.normal(keys[3], (1, E), jnp.float32) * 0.01,
        "bk": jax.random.normal(keys[4], (1, E), jnp.float32) * 0.01,
        "bv": jax.random.normal(keys[5], (1, E), jnp.float32) * 0.01,
        "wo": jax.random.normal(keys[6], (E, E), jnp.float32) * scale,
        "bo": jax.random.normal(keys[7], (1, E), jnp.float32) * 0.01,
        "gamma": 1.0 + 0.05 * jax.random.normal(keys[8], (1, E), jnp.float32),
        "beta": 0.05 * jax.random.normal(keys[9], (1, E), jnp.float32),
    }

    # Input in PyTorch batch_first=False layout: (seq, batch, embed)
    x = jax.random.normal(keys[10], (SEQ_LEN, BATCH, EMBED_DIM), jnp.float32)

    packed = pack_params(params)            # one-time weight fusion / pre-transpose
    out = multi_head_attention(x, packed)
    out = jax.block_until_ready(out)

    ref = reference(x, params)
    assert out.shape == (SEQ_LEN, BATCH, EMBED_DIM)
    # f32 end-to-end with exact softmax divide: only reduction-order differences remain.
    assert jnp.allclose(out, ref, rtol=1e-3, atol=1e-3), "mismatch vs reference"

    print("KERNEL_OK")
</pallas_src>

<mosaic_0001>
module attributes {stable_mosaic.version = 11 : i64} {
  func.func @mha_kernel(%arg0: i32, %arg1: memref<8x32xf32, #tpu.memory_space<vmem>>, %arg2: memref<32x96xf32, #tpu.memory_space<vmem>>, %arg3: memref<32x32xf32, #tpu.memory_space<vmem>>, %arg4: memref<2x96xf32, #tpu.memory_space<vmem>>, %arg5: memref<8x32xf32, #tpu.memory_space<vmem>>) attributes {dimension_semantics = [#tpu.dimension_semantics<parallel>], iteration_bounds = array<i64: 2>, scalar_prefetch = 0 : i64, scratch_operands = 0 : i64, tpu.core_type = #tpu.core_type<tc>, window_params = [{transform_indices = @transform_0, window_bounds = array<i64: 8, 32>}, {pipeline_mode = #tpu.pipeline_mode<synchronous>, transform_indices = @transform_1, window_bounds = array<i64: 32, 96>}, {pipeline_mode = #tpu.pipeline_mode<synchronous>, transform_indices = @transform_2, window_bounds = array<i64: 32, 32>}, {pipeline_mode = #tpu.pipeline_mode<synchronous>, transform_indices = @transform_3, window_bounds = array<i64: 2, 96>}, {transform_indices = @transform_4, window_bounds = array<i64: 8, 32>}]} {
    %c0 = arith.constant 0 : index
    %c0_0 = arith.constant 0 : index
    %0 = vector.load %arg1[%c0, %c0_0] : memref<8x32xf32, #tpu.memory_space<vmem>>, vector<8x32xf32>
    %c0_1 = arith.constant 0 : index
    %c0_2 = arith.constant 0 : index
    %1 = vector.load %arg4[%c0_1, %c0_2] : memref<2x96xf32, #tpu.memory_space<vmem>>, vector<2x96xf32>
    %2 = vector.extract_strided_slice %1 {offsets = [0, 0], sizes = [1, 96], strides = [1, 1]} : vector<2x96xf32> to vector<1x96xf32>
    %3 = vector.extract_strided_slice %1 {offsets = [1, 0], sizes = [1, 32], strides = [1, 1]} : vector<2x96xf32> to vector<1x32xf32>
    %4 = vector.extract_strided_slice %1 {offsets = [1, 32], sizes = [1, 32], strides = [1, 1]} : vector<2x96xf32> to vector<1x32xf32>
    %5 = vector.extract_strided_slice %1 {offsets = [1, 64], sizes = [1, 32], strides = [1, 1]} : vector<2x96xf32> to vector<1x32xf32>
    %c0_3 = arith.constant 0 : index
    %c0_4 = arith.constant 0 : index
    %6 = vector.load %arg2[%c0_3, %c0_4] : memref<32x96xf32, #tpu.memory_space<vmem>>, vector<32x96xf32>
    %cst = arith.constant dense<0.000000e+00> : vector<8x96xf32>
    %7 = tpu.matmul %0, %6, %cst {dimension_numbers = #tpu.dot_dimension_numbers<[1], [0], [0], [1], [0, 0, 1, 1], [], []>} : vector<8x32xf32>, vector<32x96xf32>, vector<8x96xf32> -> vector<8x96xf32>
    %8 = vector.broadcast %2 : vector<1x96xf32> to vector<8x96xf32>
    %9 = arith.addf %7, %8 : vector<8x96xf32>
    %10 = vector.extract_strided_slice %9 {offsets = [0, 0], sizes = [8, 32], strides = [1, 1]} : vector<8x96xf32> to vector<8x32xf32>
    %11 = vector.shape_cast %10 : vector<8x32xf32> to vector<8x4x8xf32>
    %12 = tpu.transpose %11, [1, 0, 2] : vector<8x4x8xf32> -> vector<4x8x8xf32>
    %13 = vector.extract_strided_slice %9 {offsets = [0, 32], sizes = [8, 32], strides = [1, 1]} : vector<8x96xf32> to vector<8x32xf32>
    %14 = vector.shape_cast %13 : vector<8x32xf32> to vector<8x4x8xf32>
    %15 = tpu.transpose %14, [1, 0, 2] : vector<8x4x8xf32> -> vector<4x8x8xf32>
    %16 = vector.extract_strided_slice %9 {offsets = [0, 64], sizes = [8, 32], strides = [1, 1]} : vector<8x96xf32> to vector<8x32xf32>
    %17 = vector.shape_cast %16 : vector<8x32xf32> to vector<8x4x8xf32>
    %18 = tpu.transpose %17, [1, 0, 2] : vector<8x4x8xf32> -> vector<4x8x8xf32>
    "tpu.trace_start"() <{level = 10 : i32, message = "hqd,hkd->hqk"}> : () -> ()
    %cst_5 = arith.constant dense<0.000000e+00> : vector<4x8x8xf32>
    %19 = tpu.matmul %12, %15, %cst_5 {dimension_numbers = #tpu.dot_dimension_numbers<[2], [2], [1], [1], [0, 0, 0, 1, 1, 1], [0], [0]>} : vector<4x8x8xf32>, vector<4x8x8xf32>, vector<4x8x8xf32> -> vector<4x8x8xf32>
    "tpu.trace_stop"() : () -> ()
    %cst_6 = arith.constant dense<0xFF800000> : vector<4x8xf32>
    %20 = vector.multi_reduction <maximumf>, %19, %cst_6 [2] : vector<4x8x8xf32> to vector<4x8xf32>
    %21 = vector.shape_cast %20 : vector<4x8xf32> to vector<4x8x1xf32>
    %22 = vector.broadcast %21 : vector<4x8x1xf32> to vector<4x8x8xf32>
    %23 = arith.subf %19, %22 : vector<4x8x8xf32>
    %24 = math.exp %23 : vector<4x8x8xf32>
    %cst_7 = arith.constant dense<0.000000e+00> : vector<4x8xf32>
    %25 = vector.multi_reduction <add>, %24, %cst_7 [2] : vector<4x8x8xf32> to vector<4x8xf32>
    %26 = vector.shape_cast %25 : vector<4x8xf32> to vector<4x8x1xf32>
    %27 = vector.broadcast %26 : vector<4x8x1xf32> to vector<4x8x8xf32>
    %28 = arith.divf %24, %27 : vector<4x8x8xf32>
    "tpu.trace_start"() <{level = 10 : i32, message = "hqk,hkd->hqd"}> : () -> ()
    %cst_8 = arith.constant dense<0.000000e+00> : vector<4x8x8xf32>
    %29 = tpu.matmul %28, %18, %cst_8 {dimension_numbers = #tpu.dot_dimension_numbers<[2], [1], [1], [2], [0, 0, 0, 1, 1, 2], [0], [0]>} : vector<4x8x8xf32>, vector<4x8x8xf32>, vector<4x8x8xf32> -> vector<4x8x8xf32>
    "tpu.trace_stop"() : () -> ()
    %30 = tpu.transpose %29, [1, 0, 2] : vector<4x8x8xf32> -> vector<8x4x8xf32>
    %31 = vector.shape_cast %30 : vector<8x4x8xf32> to vector<8x32xf32>
    %c0_9 = arith.constant 0 : index
    %c0_10 = arith.constant 0 : index
    %32 = vector.load %arg3[%c0_9, %c0_10] : memref<32x32xf32, #tpu.memory_space<vmem>>, vector<32x32xf32>
    %cst_11 = arith.constant dense<0.000000e+00> : vector<8x32xf32>
    %33 = tpu.matmul %31, %32, %cst_11 {dimension_numbers = #tpu.dot_dimension_numbers<[1], [0], [0], [1], [0, 0, 1, 1], [], []>} : vector<8x32xf32>, vector<32x32xf32>, vector<8x32xf32> -> vector<8x32xf32>
    %34 = vector.broadcast %3 : vector<1x32xf32> to vector<8x32xf32>
    %35 = arith.addf %33, %34 : vector<8x32xf32>
    %36 = arith.addf %0, %35 : vector<8x32xf32>
    %cst_12 = arith.constant dense<0.000000e+00> : vector<8xf32>
    %37 = vector.multi_reduction <add>, %36, %cst_12 [1] : vector<8x32xf32> to vector<8xf32>
    %38 = vector.shape_cast %37 : vector<8xf32> to vector<8x1xf32>
    %cst_13 = arith.constant 3.200000e+01 : f32
    %39 = vector.broadcast %cst_13 : f32 to vector<8x1xf32>
    %40 = arith.divf %38, %39 : vector<8x1xf32>
    %41 = vector.broadcast %40 : vector<8x1xf32> to vector<8x32xf32>
    %42 = arith.subf %36, %41 : vector<8x32xf32>
    %43 = vector.broadcast %40 : vector<8x1xf32> to vector<8x32xf32>
    %44 = arith.subf %36, %43 : vector<8x32xf32>
    %45 = arith.mulf %42, %44 : vector<8x32xf32>
    %cst_14 = arith.constant dense<0.000000e+00> : vector<8xf32>
    %46 = vector.multi_reduction <add>, %45, %cst_14 [1] : vector<8x32xf32> to vector<8xf32>
    %47 = vector.shape_cast %46 : vector<8xf32> to vector<8x1xf32>
    %cst_15 = arith.constant 3.200000e+01 : f32
    %48 = vector.broadcast %cst_15 : f32 to vector<8x1xf32>
    %49 = arith.divf %47, %48 : vector<8x1xf32>
    %50 = vector.broadcast %40 : vector<8x1xf32> to vector<8x32xf32>
    %51 = arith.subf %36, %50 : vector<8x32xf32>
    %cst_16 = arith.constant 9.99999974E-6 : f32
    %52 = vector.broadcast %cst_16 : f32 to vector<8x1xf32>
    %53 = arith.addf %49, %52 : vector<8x1xf32>
    %54 = math.rsqrt %53 : vector<8x1xf32>
    %55 = vector.broadcast %54 : vector<8x1xf32> to vector<8x32xf32>
    %56 = arith.mulf %51, %55 : vector<8x32xf32>
    %57 = vector.broadcast %4 : vector<1x32xf32> to vector<8x32xf32>
    %58 = arith.mulf %56, %57 : vector<8x32xf32>
    %59 = vector.broadcast %5 : vector<1x32xf32> to vector<8x32xf32>
    %60 = arith.addf %58, %59 : vector<8x32xf32>
    %c0_17 = arith.constant 0 : index
    %c0_18 = arith.constant 0 : index
    %61 = vector.load %arg5[%c0_17, %c0_18] : memref<8x32xf32, #tpu.memory_space<vmem>>, vector<8x32xf32>
    tpu.vector_store %arg5[%c0_17, %c0_18], %60 {strides = array<i32>} : memref<8x32xf32, #tpu.memory_space<vmem>>, vector<8x32xf32>,
    return
  }
  func.func @transform_0(%arg0: i32) -> (i32, i32) {
    %c0_i32 = arith.constant 0 : i32
    %c0_i32_0 = arith.constant 0 : i32
    return %arg0, %c0_i32 : i32, i32
  }
  func.func @transform_1(%arg0: i32) -> (i32, i32) {
    %c0_i32 = arith.constant 0 : i32
    %c0_i32_0 = arith.constant 0 : i32
    %c0_i32_1 = arith.constant 0 : i32
    return %c0_i32, %c0_i32_0 : i32, i32
  }
  func.func @transform_2(%arg0: i32) -> (i32, i32) {
    %c0_i32 = arith.constant 0 : i32
    %c0_i32_0 = arith.constant 0 : i32
    %c0_i32_1 = arith.constant 0 : i32
    return %c0_i32, %c0_i32_0 : i32, i32
  }
  func.func @transform_3(%arg0: i32) -> (i32, i32) {
    %c0_i32 = arith.constant 0 : i32
    %c0_i32_0 = arith.constant 0 : i32
    %c0_i32_1 = arith.constant 0 : i32
    return %c0_i32, %c0_i32_0 : i32, i32
  }
  func.func @transform_4(%arg0: i32) -> (i32, i32) {
    %c0_i32 = arith.constant 0 : i32
    %c0_i32_0 = arith.constant 0 : i32
    return %arg0, %c0_i32 : i32, i32
  }
}

</mosaic_0001>

<bundles_post_ra>
// kernel: multi_head_attention.1
= control target key start
LH: loop header
LB: loop body
LE: loop exit
PB: predicated region body
PF: predicated region fallthrough
CT: control target
= control target key end

     0   :  { %9 = vsyncpa [#allocation3], 0  ;;  %s1327_s15 = smov 0   ;;  %s1623_s0 = inlined_call_operand.vmem [shape: f32[16,32], index: 0, kind: input, shape index: {}]   ;;  %s1624_s1 = inlined_call_operand.vmem [shape: f32[32,96], index: 1, kind: input, shape index: {}]   ;;  %s1625_s2 = inlined_call_operand.hbm [shape: f32[32,32], index: 2, kind: input, shape index: {}]   ;;  %s1626_s3 = inlined_call_operand.vmem [shape: f32[2,96], index: 3, kind: input, shape index: {}]   ;;  %s1627_s4 = inlined_call_operand.vmem [shape: f32[16,32], index: 4, kind: output, shape index: {}]  }
   0x1 LB: > { %s149_s18 = sshll.u32 %s1625_s2, 4  ;;  %s1159_s19 = sadd.s32 4294967295, %s1286_s15   ;;  %s1286_s15 = sphi %s1327_s15, %s15_s15   ;;  %s150_s18 = int_to_ptr.hbm [resolvable:$true] %s149_s18 }
   0x2   : > { %p1161_p0 = scmp.ge.s32.totalorder %s1286_s15, 1  ;;  %p135_p1 = scmp.lt.s32.totalorder %s1286_s15, 3 }
   0x3   : > { %p1192_p2 = scmp.eq.s32.totalorder %s1159_s19, 0  ;;  %s1288_s20 = smov [#allocation2]  }
   0x4   : > { %p136_p3 = pnand %p1161_p0, %p135_p1  ;;  %s151_s21 = sshll.u32 %s1288_s20, 4  ;;  %s152_s21 = int_to_ptr.vmem [resolvable:$true] %s151_s21 }
   0x5   : > { %s1289_s22 = smov 128   ;;  %s1290_s23 = smov 8  }
   0x6   : > { %p1188_p4 = pneg %p136_p3  ;;  %177 = sbr.rel (%p136_p3) target bundleno = 1482 (0x5ca), region = 36 }
   0x8   : > { %p1189_p5 = pnand %p1192_p2, %p1188_p4 }
   0xa   : > { %1191 = dma.hbm_to_vmem [thread:$0]  (!%p1189_p5), %s150_s18, 512, %s152_s21, [#allocation3], %s1289_s22, %s1289_s22, %s1290_s23  }
   0xb   : > { %1281 = dma.done.wait (%p1192_p2), [#allocation3], 512  }
   0xc   : > { %1283 = vsyncadd (%p1192_p2), [#allocation3], 4294966784  ;;  %p202_p6 = scmp.lt.s32.totalorder %s1159_s19, 1  ;;  %v215_v0 = vld [vmem:[%s1624_s1 + $0x18] sm:$0xff]  ;;  %v214_v1 = vld [vmem:[%s1624_s1 + $0x10] sm:$0xff]  ;;  %vm217_vm0 = vcmask 261120  }
   0xd   : > { %233 = vmatpush.msra.mxu0 %v215_v0  ;;  %v213_v2 = vld [vmem:[%s1624_s1 + $0x8] sm:$0xff]  ;;  %v212_v3 = vld [vmem:[%s1624_s1] sm:$0xff]  ;;  %s1291_s12 = smov 96   ;;  %s1292_s13 = smov 120   ;;  %v1295_v12 = vmov 1983009808  }
   0xe   : > { %s1629_s19 = smov (!%p202_p6, %s1159_s19), 1  ;;  %v1365_v5 = vld [vmem:[%s1626_s3] sm:$0x3]  ;;  %s1293_s14 = smov 112   ;;  %v257_v13 = vunpack.c.l.s4 %v1295_v12  ;;  %vm252_vm1 = vcmask 1047556   ;;  %vm606_vm2 = vcmask 64512  }
   0xf   : > { %s1166_s24 = sshll.u32 %s1629_s19, 3  ;;  %234 = vmatpush.msra.mxu0 %v214_v1  ;;  %v216_v6 = vperm.slane %v1365_v5, 0  ;;  %s1294_s16 = smov 104   ;;  %v1296_v23 = vmov 1934713408  }
  0x10   : > { %s205_s7 = scalar_lea.vmem %s1623_s0, %s1166_s24  ;;  %v1389_v16 = vunpack.c.0.s8 %v257_v13  ;;  %v281_v24 = vunpack.c.l.s4 %v1296_v23  ;;  %s1297_s17 = smov 64  }
  0x11   : > { %235 = vmatpush.msra.mxu0 %v213_v2  ;;  %v1358_v4 = vld [vmem:[%s205_s7] sm:$0xff]  ;;  %s1298_s18 = smov 16   ;;  %s1299_s20 = smov 8  }
  0x12   : > { %v1405_v30 = vunpack.c.0.s8 %v281_v24  ;;  %s1300_s21 = smov 24   ;;  %s209_s25 = scalar_lea.vmem %s1627_s4, %s1166_s24 }
  0x13   : > { %236 = vmatpush.msra.mxu0 %v212_v3 }
  0x14   : > { %1168 = vmatmul.msk.f32.vlgmr.msra.gmra.mxu0 %vm217_vm0, %v1358_v4 }
  0x91   : > { %v238_v7 = vpop.f32.mrf.mxu0 }
  0x92   : > { %v1368_v8 = vadd.f32 %v238_v7, %v216_v6 }
  0x94   : > { %362 = vrot.lane.b32.xlu2 %v1368_v8, %s1291_s12  ;;  %242 = vrot.lane.b32.xlu1 %v1368_v8, %s1292_s13  ;;  %v254_v15 = vrot.slane %v1368_v8, 4 }
  0x95   : > { %245 = vrot.lane.b32.xlu0 %v1368_v8, %s1293_s14 }
  0x9d   : > { %248 = vrot.lane.b32.xlu0 %v1368_v8, %s1294_s16 }
  0xee   : > { %v363_v34 = vpop.permute.xlu2 %362 }
  0xef   : > { %v376_v49 = vrot.slane %v363_v34, 4 }
 0x106   : > { %v1375_v9 = vpop.permute.xlu1 %242 }
 0x107   : > { %v1377_v10 = vpop.permute.xlu0 %245  ;;  %364 = vrot.lane.b32.xlu0 %v1375_v9, %s1291_s12  ;;  %v266_v17 = vrot.slane %v1375_v9, 4 }
 0x108   : > { %366 = vrot.lane.b32.xlu1 %v1377_v10, %s1291_s12  ;;  %v251_v14 = vrot.slane %v1377_v10, 4  ;;  %v255_v18 = vsel %vm252_vm1, %v1377_v10, %v254_v15 }
 0x109   : > { %v263_v22 = vperm.slane %v255_v18, %v1389_v16 }
 0x10a   : > { %v253_v20 = vsel %vm252_vm1, %v251_v14, %v1368_v8 }
 0x10b   : > { %v259_v26 = vperm.slane %v253_v20, %v1389_v16  ;;  %v290_v28 = vrot.slane %v263_v22, 4 }
 0x10d   : > { %v278_v31 = vrot.slane %v259_v26, 4 }
 0x10f   : > { %v1383_v11 = vpop.permute.xlu0 %248 }
 0x110   : > { %368 = vrot.lane.b32.xlu2 %v1383_v11, %s1291_s12  ;;  %v264_v19 = vrot.slane %v1383_v11, 4  ;;  %v267_v21 = vsel %vm252_vm1, %v1383_v11, %v266_v17 }
 0x111   : > { %v275_v27 = vperm.slane %v267_v21, %v1389_v16 }
 0x112   : > { %v265_v25 = vsel %vm252_vm1, %v264_v19, %v1375_v9 }
 0x113   : > { %v271_v29 = vperm.slane %v265_v25, %v1389_v16  ;;  %v288_v32 = vrot.slane %v275_v27, 4  ;;  %v291_v33 = vsel %vm252_vm1, %v275_v27, %v290_v28 }
 0x114   : > { %v299_v37 = vperm.slane %v291_v33, %v1405_v30 }
 0x115   : > { %v276_v35 = vrot.slane %v271_v29, 4  ;;  %v279_v36 = vsel %vm252_vm1, %v271_v29, %v278_v31  ;;  %v289_v38 = vsel %vm252_vm1, %v288_v32, %v263_v22 }
 0x116   : > { %v287_v39 = vperm.slane %v279_v36, %v1405_v30  ;;  %v295_v41 = vperm.slane %v289_v38, %v1405_v30  ;;  %v306_v42 = vrot.slane %v299_v37, 4 }
 0x117   : > { %v277_v40 = vsel %vm252_vm1, %v276_v35, %v259_v26 }
 0x118   : > { %v283_v43 = vperm.slane %v277_v40, %v1405_v30  ;;  %v302_v44 = vrot.slane %v287_v39, 4  ;;  %v304_v46 = vrot.slane %v295_v41, 4  ;;  %v307_v47 = vsel %vm252_vm1, 0.0, %v306_v42 }
 0x119   : > { %v324_v53 = vrot.slane %v307_v47, 4  ;;  %v319_v57 = vsel %vm252_vm1, %v306_v42, %v295_v41 }
 0x11a   : > { %v300_v51 = vrot.slane %v283_v43, 4  ;;  %v303_v52 = vsel %vm252_vm1, 0.0, %v302_v44  ;;  %v305_v61 = vsel %vm252_vm1, 0.0, %v304_v46  ;;  %v308_v0 = vsel %vm252_vm1, %v302_v44, %v283_v43 }
 0x11b   : > { %v313_v1 = vrot.slane %v303_v52, 4  ;;  %v312_v15 = vperm.slane %v308_v0, %v1389_v16  ;;  %v323_v17 = vperm.slane %v319_v57, %v1389_v16  ;;  %v325_v18 = vsel %vm252_vm1, %v324_v53, %v305_v61 }
 0x11c   : > { %v301_v7 = vsel %vm252_vm1, 0.0, %v300_v51  ;;  %v329_v28 = vperm.slane %v325_v18, %v1389_v16 }
 0x11d   : > { %v314_v22 = vsel %vm252_vm1, %v313_v1, %v301_v7  ;;  %v344_v33 = vrot.slane %v323_v17, 4  ;;  %v332_v35 = vrot.slane %v312_v15, 4 }
 0x11e   : > { %v318_v32 = vperm.slane %v314_v22, %v1389_v16  ;;  %v342_v43 = vrot.slane %v329_v28, 4 }
 0x11f   : > { %v345_v46 = vsel %vm252_vm1, %v329_v28, %v344_v33 }
 0x120   : > { %v330_v47 = vrot.slane %v318_v32, 4 }
 0x16a   : > { %v369_v45 = vpop.permute.xlu2 %368 }
 0x16b   : > { %v386_v48 = vrot.slane %v369_v45, 4 }
 0x179   : > { %v365_v50 = vpop.permute.xlu0 %364 }
 0x17a   : > { %v367_v54 = vpop.permute.xlu1 %366  ;;  %v387_v55 = vsel %vm252_vm1, %v386_v48, %v365_v50  ;;  %v388_v56 = vrot.slane %v365_v50, 4 }
 0x17b   : > { %v374_v58 = vrot.slane %v367_v54, 4  ;;  %v377_v59 = vsel %vm252_vm1, %v367_v54, %v376_v49  ;;  %v393_v60 = vperm.slane %v387_v55, %v1389_v16 }
 0x17c   : > { %v385_v62 = vperm.slane %v377_v59, %v1389_v16  ;;  %v389_v63 = vsel %vm252_vm1, %v369_v45, %v388_v56  ;;  %v343_v56 = vsel %vm252_vm1, %v342_v43, %v323_v17  ;;  %v1221_v43 = vpack.i.bf16 %v1383_v11, %v1377_v10 }
 0x17d   : > { %v375_v2 = vsel %vm252_vm1, %v374_v58, %v363_v34  ;;  %v397_v3 = vperm.slane %v389_v63, %v1389_v16  ;;  %v398_v6 = vrot.slane %v393_v60, 4  ;;  %v331_v63 = vsel %vm252_vm1, %v330_v47, %v312_v15 }
 0x17e   : > { %v381_v12 = vperm.slane %v375_v2, %v1389_v16  ;;  %v412_v13 = vrot.slane %v385_v62, 4  ;;  %v337_v15 = vperm.slane %v331_v63, %v1405_v30 }
 0x17f   : > { %v410_v14 = vrot.slane %v397_v3, 4 }
 0x180   : > { %v400_v19 = vrot.slane %v381_v12, 4  ;;  %v399_v20 = vsel %vm252_vm1, %v398_v6, %v381_v12  ;;  %v413_v21 = vsel %vm252_vm1, %v397_v3, %v412_v13  ;;  %v349_v3 = vperm.slane %v343_v56, %v1405_v30 }
 0x181   : > { %v405_v23 = vperm.slane %v399_v20, %v1405_v30  ;;  %v411_v24 = vsel %vm252_vm1, %v410_v14, %v385_v62  ;;  %v421_v25 = vperm.slane %v413_v21, %v1405_v30  ;;  %v333_v62 = vsel %vm252_vm1, %v318_v32, %v332_v35 }
 0x182   : > { %v401_v26 = vsel %vm252_vm1, %v393_v60, %v400_v19  ;;  %v417_v27 = vperm.slane %v411_v24, %v1405_v30  ;;  %v353_v60 = vperm.slane %v345_v46, %v1405_v30  ;;  %v341_v14 = vperm.slane %v333_v62, %v1405_v30 }
 0x183   : > { %v409_v29 = vperm.slane %v401_v26, %v1405_v30  ;;  %v428_v31 = vrot.slane %v421_v25, 4  ;;  %v422_v36 = vrot.slane %v405_v23, 4  ;;  %v354_v22 = vrot.slane %v349_v3, 4 }
 0x184   : > { %v426_v34 = vrot.slane %v417_v27, 4  ;;  %v358_v17 = vrot.slane %v353_v60, 4  ;;  %v360_v32 = vrot.slane %v341_v14, 4 }
 0x185   : > { %v424_v37 = vrot.slane %v409_v29, 4  ;;  %v429_v38 = vsel %vm252_vm1, 0.0, %v428_v31  ;;  %v441_v39 = vsel %vm252_vm1, %v428_v31, %v417_v27  ;;  %v423_v52 = vsel %vm252_vm1, 0.0, %v422_v36 }
 0x186   : > { %v446_v40 = vrot.slane %v429_v38, 4  ;;  %v427_v41 = vsel %vm252_vm1, 0.0, %v426_v34  ;;  %v445_v42 = vperm.slane %v441_v39, %v1389_v16  ;;  %v359_v26 = vsel %vm252_vm1, %v358_v17, %v341_v14 }
 0x187   : > { %v425_v44 = vsel %vm252_vm1, 0.0, %v424_v37  ;;  %v430_v45 = vsel %vm252_vm1, %v424_v37, %v405_v23  ;;  %v356_v27 = vrot.slane %v337_v15, 4  ;;  %v355_v29 = vsel %vm252_vm1, %v354_v22, %v337_v15 }
 0x188   : > { %v435_v48 = vrot.slane %v425_v44, 4  ;;  %v434_v49 = vperm.slane %v430_v45, %v1389_v16  ;;  %v447_v50 = vsel %vm252_vm1, %v446_v40, %v427_v41  ;;  %v466_v51 = vrot.slane %v445_v42, 4 }
 0x189   : > { %v451_v53 = vperm.slane %v447_v50, %v1389_v16  ;;  %v357_v31 = vsel %vm252_vm1, %v349_v3, %v356_v27  ;;  %v361_v33 = vsel %vm252_vm1, %v353_v60, %v360_v32 }
 0x18a   : > { %v436_v54 = vsel %vm252_vm1, %v435_v48, %v423_v52  ;;  %v454_v55 = vrot.slane %v434_v49, 4 }
 0x18b   : > { %v440_v57 = vperm.slane %v436_v54, %v1389_v16  ;;  %v467_v58 = vsel %vm252_vm1, %v451_v53, %v466_v51  ;;  %v464_v59 = vrot.slane %v451_v53, 4 }
 0x18c   : > { %v475_v61 = vperm.slane %v467_v58, %v1405_v30 }
 0x18d   : > { %v455_v0 = vsel %vm252_vm1, %v440_v57, %v454_v55  ;;  %v452_v1 = vrot.slane %v440_v57, 4  ;;  %v465_v2 = vsel %vm252_vm1, %v464_v59, %v445_v42  ;;  %v1216_v42 = vpack.i.bf16 %v1375_v9, %v1368_v8 }
 0x18e   : > { %v463_v6 = vperm.slane %v455_v0, %v1405_v30  ;;  %v480_v7 = vrot.slane %v475_v61, 4  ;;  %v471_v12 = vperm.slane %v465_v2, %v1405_v30 }
 0x18f   : > { %v453_v13 = vsel %vm252_vm1, %v452_v1, %v434_v49 }
 0x190   : > { %v481_v18 = vsel %vm252_vm1, %v480_v7, %v463_v6  ;;  %v459_v19 = vperm.slane %v453_v13, %v1405_v30  ;;  %v476_v20 = vrot.slane %v471_v12, 4  ;;  %v482_v21 = vrot.slane %v463_v6, 4 }
 0x191   : > { %1173 = vmatpush.xpose.msk.msra.mxu3 %vm606_vm2, %v481_v18 }
 0x192   : > { %v477_v23 = vsel %vm252_vm1, %v476_v20, %v459_v19  ;;  %v483_v24 = vsel %vm252_vm1, %v475_v61, %v482_v21  ;;  %v478_v25 = vrot.slane %v459_v19, 4 }
 0x193   : > { %1169 = vmatpush.xpose.msk.msra.mxu1 %vm606_vm2, %v477_v23 }
 0x194   : > { %1174 = vmatmul.msk.f32.vlgmr.msra.gmra.mxu3 %vm606_vm2, %v359_v26  ;;  %v479_v28 = vsel %vm252_vm1, %v471_v12, %v478_v25 }
 0x195   : > { %1171 = vmatpush.xpose.msk.msra.mxu2 %vm606_vm2, %v479_v28 }
 0x196   : > { %1170 = vmatmul.msk.f32.vlgmr.msra.gmra.mxu1 %vm606_vm2, %v355_v29 }
 0x197   : > { %1175 = vmatpush.xpose.msk.msrb.mxu1 %vm606_vm2, %v483_v24 }
 0x198   : > { %1172 = vmatmul.msk.f32.vlgmr.msra.gmra.mxu2 %vm606_vm2, %v357_v31 }
 0x19e   : > { %1176 = vmatmul.msk.f32.vlgmr.msrb.gmra.mxu1 %vm606_vm2, %v361_v33 }
 0x213   : > { %v630_v34 = vpop.f32.mrf.mxu1 }
 0x214   : > { %v711_v35 = vsel %vm606_vm2, %v630_v34, -inf }
 0x215   : > { %712 = vmax.xlane.f32.xlu1 %v711_v35 }
 0x217   : > { %v682_v36 = vpop.f32.mrf.mxu3 }
 0x218   : > { %v717_v37 = vsel %vm606_vm2, %v682_v36, -inf }
 0x219   : > { %718 = vmax.xlane.f32.xlu0 %v717_v37 }
 0x21b   : > { %v656_v38 = vpop.f32.mrf.mxu2  ;;  %v708_v40 = vpop.f32.mrf.mxu1 }
 0x21c   : > { %v714_v39 = vsel %vm606_vm2, %v656_v38, -inf  ;;  %v720_v41 = vsel %vm606_vm2, %v708_v40, -inf }
 0x21d   : > { %715 = vmax.xlane.f32.xlu2 %v714_v39 }
 0x225   : > { %721 = vmax.xlane.f32.xlu2 %v720_v41 }
 0x22e   : > { %1217 = vrot.lane.b32.xlu1 %v1216_v42, %s1297_s17 }
 0x23d   : > { %1222 = vrot.lane.b32.xlu2 %v1221_v43, %s1297_s17 }
 0x288   : > { %v713_v44 = vpop.xlane.xlu1 %712 }
 0x289   : > { %v723_v45 = vsub.f32 %v630_v34, %v713_v44 }
 0x28b   : > { %v727_v46 = vmul.f32 1.442695, %v723_v45 }
 0x28c   : > { %v719_v47 = vpop.xlane.xlu0 %718 }
 0x28d   : > { %1226 = vpow2.f32 %v727_v46  ;;  %v725_v51 = vsub.f32 %v682_v36, %v719_v47 }
 0x28f   : > { %v731_v9 = vmul.f32 1.442695, %v725_v51 }
 0x290   : > { %v716_v48 = vpop.xlane.xlu2 %715 }
 0x291   : > { %v724_v49 = vsub.f32 %v656_v38, %v716_v48 }
 0x293   : > { %v1497_v50 = vpop.eup %1226  ;;  %v729_v52 = vmul.f32 1.442695, %v724_v49 }
 0x294   : > { %v735_v8 = vsel %vm606_vm2, %v1497_v50, 0.0 }
 0x295   : > { %1228 = vpow2.f32 %v729_v52  ;;  %736 = vadd.xlane.f32.xlu0 %v735_v8 }
 0x296   : > { %1230 = vpow2.f32 %v731_v9 }
 0x298   : > { %v722_v10 = vpop.xlane.xlu2 %721 }
 0x299   : > { %v726_v11 = vsub.f32 %v708_v40, %v722_v10 }
 0x29b   : > { %v1501_v53 = vpop.eup %1228  ;;  %v733_v54 = vmul.f32 1.442695, %v726_v11 }
 0x29c   : > { %v738_v55 = vsel %vm606_vm2, %v1501_v53, 0.0  ;;  %v1505_v58 = vpop.eup %1230 }
 0x29d   : > { %1232 = vpow2.f32 %v733_v54  ;;  %739 = vadd.xlane.f32.xlu0 %v738_v55  ;;  %v741_v6 = vsel %vm606_vm2, %v1505_v58, 0.0 }
 0x2a0   : > { %v1218_v56 = vpop.permute.xlu1 %1217  ;;  %v1223_v57 = vpop.permute.xlu2 %1222 }
 0x2a1   : > { %v1220_v59 = vunpack.i.h.bf16 %v1218_v56  ;;  %v1219_v60 = vunpack.i.l.bf16 %v1218_v56  ;;  %v1225_v61 = vunpack.i.h.bf16 %v1223_v57  ;;  %v1224_v62 = vunpack.i.l.bf16 %v1223_v57 }
 0x2a3   : > { %v1507_v63 = vpop.eup %1232  ;;  %v510_v0 = vrot.slane %v1220_v59, 4  ;;  %v498_v1 = vrot.slane %v1219_v60, 4  ;;  %v508_v2 = vrot.slane %v1225_v61, 4  ;;  %v496_v3 = vrot.slane %v1224_v62, 4 }
 0x2a4   : > { %v744_v7 = vsel %vm606_vm2, %v1507_v63, 0.0 }
 0x2a5   : > { %v509_v12 = vsel %vm252_vm1, %v508_v2, %v1220_v59  ;;  %v511_v13 = vsel %vm252_vm1, %v1225_v61, %v510_v0  ;;  %v497_v14 = vsel %vm252_vm1, %v496_v3, %v1219_v60  ;;  %v499_v17 = vsel %vm252_vm1, %v1224_v62, %v498_v1  ;;  %742 = vadd.xlane.f32.xlu0 %v741_v6 }
 0x2a6   : > { %v515_v15 = vperm.slane %v509_v12, %v1389_v16  ;;  %v519_v18 = vperm.slane %v511_v13, %v1389_v16  ;;  %v503_v19 = vperm.slane %v497_v14, %v1389_v16  ;;  %v507_v20 = vperm.slane %v499_v17, %v1389_v16  ;;  %745 = vadd.xlane.f32.xlu1 %v744_v7 }
 0x2a7   : > { %v1554_v14 = vperm.slane %v1365_v5, 1 }
 0x2a8   : > { %v520_v21 = vrot.slane %v515_v15, 4  ;;  %v532_v22 = vrot.slane %v519_v18, 4  ;;  %v522_v23 = vrot.slane %v503_v19, 4  ;;  %v534_v24 = vrot.slane %v507_v20, 4 }
 0x2aa   : > { %v521_v25 = vsel %vm252_vm1, %v520_v21, %v503_v19  ;;  %v523_v26 = vsel %vm252_vm1, %v515_v15, %v522_v23  ;;  %v533_v27 = vsel %vm252_vm1, %v532_v22, %v507_v20  ;;  %v535_v28 = vsel %vm252_vm1, %v519_v18, %v534_v24 }
 0x2ab   : > { %v527_v29 = vperm.slane %v521_v25, %v1405_v30  ;;  %v531_v31 = vperm.slane %v523_v26, %v1405_v30  ;;  %v539_v32 = vperm.slane %v533_v27, %v1405_v30  ;;  %v543_v33 = vperm.slane %v535_v28, %v1405_v30 }
 0x2ad   : > { %v546_v34 = vrot.slane %v531_v31, 4  ;;  %v548_v35 = vrot.slane %v539_v32, 4  ;;  %v550_v36 = vrot.slane %v543_v33, 4  ;;  %v544_v37 = vrot.slane %v527_v29, 4 }
 0x2af   : > { %v551_v38 = vsel %vm252_vm1, 0.0, %v550_v36  ;;  %v547_v39 = vsel %vm252_vm1, 0.0, %v546_v34  ;;  %v552_v41 = vsel %vm252_vm1, %v546_v34, %v527_v29  ;;  %v563_v43 = vsel %vm252_vm1, %v550_v36, %v539_v32 }
 0x2b0   : > { %v568_v40 = vrot.slane %v551_v38, 4  ;;  %v557_v42 = vrot.slane %v547_v39, 4  ;;  %v545_v44 = vsel %vm252_vm1, 0.0, %v544_v37  ;;  %v549_v45 = vsel %vm252_vm1, 0.0, %v548_v35 }
 0x2b1   : > { %v556_v46 = vperm.slane %v552_v41, %v1389_v16  ;;  %v567_v47 = vperm.slane %v563_v43, %v1389_v16 }
 0x2b2   : > { %v558_v48 = vsel %vm252_vm1, %v557_v42, %v545_v44  ;;  %v569_v49 = vsel %vm252_vm1, %v568_v40, %v549_v45 }
 0x2b3   : > { %v562_v51 = vperm.slane %v558_v48, %v1389_v16  ;;  %v573_v52 = vperm.slane %v569_v49, %v1389_v16  ;;  %v576_v8 = vrot.slane %v556_v46, 4  ;;  %v588_v9 = vrot.slane %v567_v47, 4 }
 0x2b5   : > { %v577_v10 = vsel %vm252_vm1, %v562_v51, %v576_v8  ;;  %v589_v11 = vsel %vm252_vm1, %v573_v52, %v588_v9  ;;  %v574_v54 = vrot.slane %v562_v51, 4  ;;  %v586_v55 = vrot.slane %v573_v52, 4 }
 0x2b6   : > { %v585_v56 = vperm.slane %v577_v10, %v1405_v30  ;;  %v597_v57 = vperm.slane %v589_v11, %v1405_v30 }
 0x2b7   : > { %v575_v59 = vsel %vm252_vm1, %v574_v54, %v556_v46  ;;  %v587_v60 = vsel %vm252_vm1, %v586_v55, %v567_v47 }
 0x2b8   : > { %v602_v61 = vrot.slane %v597_v57, 4  ;;  %v604_v62 = vrot.slane %v585_v56, 4  ;;  %v581_v0 = vperm.slane %v575_v59, %v1405_v30  ;;  %v593_v1 = vperm.slane %v587_v60, %v1405_v30 }
 0x2ba   : > { %v603_v2 = vsel %vm252_vm1, %v602_v61, %v585_v56  ;;  %v605_v3 = vsel %vm252_vm1, %v597_v57, %v604_v62  ;;  %v598_v6 = vrot.slane %v593_v1, 4  ;;  %v600_v7 = vrot.slane %v581_v0, 4 }
 0x2bb   : > { %871 = vmatpush.msrb.mxu0 %v603_v2  ;;  %894 = vmatpush.msra.mxu1 %v605_v3 }
 0x2bc   : > { %v599_v12 = vsel %vm252_vm1, %v598_v6, %v581_v0  ;;  %v601_v13 = vsel %vm252_vm1, %v593_v1, %v600_v7 }
 0x2bd   : > { %825 = vmatpush.msrb.mxu2 %v599_v12  ;;  %848 = vmatpush.msrb.mxu3 %v601_v13 }
 0x2bf   : > { %1085 = vrot.lane.b32.xlu1 %v1554_v14, %s1291_s12 }
 0x308   : > { %v737_v17 = vpop.xlane.xlu0 %736 }
 0x309   : > { %1234 = vrcp.f32 %v737_v17  ;;  %v758_v22 = vand.u32 2147483648, %v737_v17  ;;  %vm752_vm4 = vweird.f32 %v737_v17  ;;  %v756_v24 = vand.u32 2147483647, %v737_v17 }
 0x30b   : > { %v759_v28 = vor.u32 1.1754944e-38, %v758_v22  ;;  %vm757_vm6 = vcmp.eq.f32.partialorder %v756_v24, 8.507059e+37 }
 0x30f   : > { %v1235_v15 = vpop.eup %1234 }
 0x310   : > { %v748_v18 = vmul.f32 %v1235_v15, %v737_v17  ;;  %v740_v19 = vpop.xlane.xlu0 %739  ;;  %vm753_vm3 = vweird.f32 %v1235_v15 }
 0x311   : > { %1236 = vrcp.f32 %v740_v19  ;;  %vm754_vm5 = vmor %vm752_vm4, %vm753_vm3  ;;  %v773_v32 = vand.u32 2147483648, %v740_v19  ;;  %v771_v35 = vand.u32 2147483647, %v740_v19  ;;  %vm767_vm8 = vweird.f32 %v740_v19 }
 0x312   : > { %v749_v20 = vsub.f32 1.0, %v748_v18 }
 0x313   : > { %v774_v39 = vor.u32 1.1754944e-38, %v773_v32  ;;  %vm772_vm10 = vcmp.eq.f32.partialorder %v771_v35, 8.507059e+37 }
 0x314   : > { %v750_v21 = vmul.f32 %v1235_v15, %v749_v20 }
 0x316   : > { %v751_v23 = vadd.f32 %v1235_v15, %v750_v21 }
 0x317   : > { %v1237_v5 = vpop.eup %1236 }
 0x318   : > { %v763_v25 = vmul.f32 %v1237_v5, %v740_v19  ;;  %v743_v26 = vpop.xlane.xlu0 %742  ;;  %v755_v27 = vsel %vm754_vm5, %v1235_v15, %v751_v23  ;;  %vm768_vm7 = vweird.f32 %v1237_v5 }
 0x319   : > { %1238 = vrcp.f32 %v743_v26  ;;  %v746_v29 = vpop.xlane.xlu1 %745  ;;  %v760_v33 = vsel %vm757_vm6, %v759_v28, %v755_v27  ;;  %vm769_vm9 = vmor %vm767_vm8, %vm768_vm7  ;;  %v788_v47 = vand.u32 2147483648, %v743_v26  ;;  %vm782_vm13 = vweird.f32 %v743_v26 }
 0x31a   : > { %v764_v31 = vsub.f32 1.0, %v763_v25  ;;  %1240 = vrcp.f32 %v746_v29  ;;  %v761_v36 = vmul.f32 %v1497_v50, %v760_v33  ;;  %v786_v50 = vand.u32 2147483647, %v743_v26 }
 0x31b   : > { %v803_v51 = vand.u32 2147483648, %v746_v29  ;;  %v801_v8 = vand.u32 2147483647, %v746_v29  ;;  %v789_v10 = vor.u32 1.1754944e-38, %v788_v47  ;;  %vm797_vm15 = vweird.f32 %v746_v29 }
 0x31c   : > { %v765_v34 = vmul.f32 %v1237_v5, %v764_v31  ;;  %1177 = vmatmul.msk.f32.vlgmr.msrb.gmra.mxu2 %vm606_vm2, %v761_v36  ;;  %vm787_vm3 = vcmp.eq.f32.partialorder %v786_v50, 8.507059e+37  ;;  %vm1022_vm6 = vcmask 130048   ;;  %vm1024_vm7 = vcmask 195584  }
 0x31d   : > { %vm802_vm5 = vcmp.eq.f32.partialorder %v801_v8, 8.507059e+37 }
 0x31e   : > { %v766_v37 = vadd.f32 %v1237_v5, %v765_v34 }
 0x31f   : > { %v1239_v38 = vpop.eup %1238 }
 0x320   : > { %v1241_v40 = vpop.eup %1240  ;;  %v778_v41 = vmul.f32 %v1239_v38, %v743_v26  ;;  %v770_v42 = vsel %vm769_vm9, %v1237_v5, %v766_v37  ;;  %vm783_vm11 = vweird.f32 %v1239_v38 }
 0x321   : > { %v793_v43 = vmul.f32 %v1241_v40, %v746_v29  ;;  %v775_v44 = vsel %vm772_vm10, %v774_v39, %v770_v42  ;;  %vm798_vm12 = vweird.f32 %v1241_v40  ;;  %vm784_vm14 = vmor %vm782_vm13, %vm783_vm11 }
 0x322   : > { %v779_v45 = vsub.f32 1.0, %v778_v41  ;;  %v776_v46 = vmul.f32 %v1501_v53, %v775_v44  ;;  %vm799_vm4 = vmor %vm797_vm15, %vm798_vm12  ;;  %v804_v53 = vor.u32 1.1754944e-38, %v803_v51 }
 0x323   : > { %v794_v48 = vsub.f32 1.0, %v793_v43 }
 0x324   : > { %v780_v49 = vmul.f32 %v1239_v38, %v779_v45  ;;  %1178 = vmatmul.msk.f32.vlgmr.msrb.gmra.mxu3 %vm606_vm2, %v776_v46 }
 0x325   : > { %v795_v52 = vmul.f32 %v1241_v40, %v794_v48 }
 0x326   : > { %v781_v9 = vadd.f32 %v1239_v38, %v780_v49 }
 0x327   : > { %v796_v11 = vadd.f32 %v1241_v40, %v795_v52 }
 0x328   : > { %v785_v54 = vsel %vm784_vm14, %v1239_v38, %v781_v9 }
 0x329   : > { %v800_v55 = vsel %vm799_vm4, %v1241_v40, %v796_v11  ;;  %v790_v56 = vsel %vm787_vm3, %v789_v10, %v785_v54 }
 0x32a   : > { %v805_v57 = vsel %vm802_vm5, %v804_v53, %v800_v55  ;;  %v791_v59 = vmul.f32 %v1505_v58, %v790_v56 }
 0x32b   : > { %v806_v60 = vmul.f32 %v1507_v63, %v805_v57 }
 0x32c   : > { %1179 = vmatmul.msk.f32.vlgmr.msrb.gmra.mxu0 %vm606_vm2, %v791_v59 }
 0x32d   : > { %1180 = vmatmul.msk.f32.vlgmr.msra.gmra.mxu1 %vm606_vm2, %v806_v60 }
 0x39f   : > { %v827_v61 = vpop.f32.mrf.mxu2 }
 0x3a0   : > { %v901_v0 = vrot.slane %v827_v61, 4 }
 0x3a7   : > { %v850_v62 = vpop.f32.mrf.mxu3 }
 0x3a8   : > { %v913_v1 = vrot.slane %v850_v62, 4 }
 0x3a9   : > { %v873_v2 = vpop.f32.mrf.mxu0 }
 0x3aa   : > { %v899_v3 = vrot.slane %v873_v2, 4  ;;  %v902_v6 = vsel %vm252_vm1, %v873_v2, %v901_v0  ;;  %v896_v7 = vpop.f32.mrf.mxu1 }
 0x3ab   : > { %v910_v12 = vperm.slane %v902_v6, %v1389_v16  ;;  %v911_v13 = vrot.slane %v896_v7, 4  ;;  %v914_v58 = vsel %vm252_vm1, %v896_v7, %v913_v1  ;;  %v1028_v6 = vld [vmem:[#allocation2 + $0x10] sm:$0xff]  ;;  %v1027_v7 = vld [vmem:[#allocation2 + $0x8] sm:$0xff] }
 0x3ac   : > { %v900_v63 = vsel %vm252_vm1, %v899_v3, %v827_v61  ;;  %v922_v17 = vperm.slane %v914_v58, %v1389_v16  ;;  %v1029_v3 = vld [vmem:[#allocation2 + $0x18] sm:$0xff] }
 0x3ad   : > { %v906_v15 = vperm.slane %v900_v63, %v1389_v16  ;;  %v937_v18 = vrot.slane %v910_v12, 4  ;;  %v912_v19 = vsel %vm252_vm1, %v911_v13, %v850_v62  ;;  %1046 = vmatpush.msra.mxu2 %v1029_v3 }
 0x3ae   : > { %v918_v20 = vperm.slane %v912_v19, %v1389_v16  ;;  %v935_v21 = vrot.slane %v922_v17, 4 }
 0x3af   : > { %v925_v22 = vrot.slane %v906_v15, 4  ;;  %v938_v23 = vsel %vm252_vm1, %v922_v17, %v937_v18  ;;  %1047 = vmatpush.msra.mxu2 %v1028_v6 }
 0x3b0   : > { %v923_v24 = vrot.slane %v918_v20, 4  ;;  %v936_v5 = vsel %vm252_vm1, %v935_v21, %v910_v12  ;;  %v946_v25 = vperm.slane %v938_v23, %v1405_v30 }
 0x3b1   : > { %v926_v26 = vsel %vm252_vm1, %v918_v20, %v925_v22  ;;  %v942_v27 = vperm.slane %v936_v5, %v1405_v30  ;;  %1048 = vmatpush.msra.mxu2 %v1027_v7  ;;  %v1301_v22 = vmov 32.0  }
 0x3b2   : > { %v924_v28 = vsel %vm252_vm1, %v923_v24, %v906_v15  ;;  %v934_v29 = vperm.slane %v926_v26, %v1405_v30  ;;  %v953_v31 = vrot.slane %v946_v25, 4  ;;  %1242 = vrcp.f32 %v1301_v22 }
 0x3b3   : > { %v930_v32 = vperm.slane %v924_v28, %v1405_v30  ;;  %v951_v33 = vrot.slane %v942_v27, 4 }
 0x3b4   : > { %v949_v34 = vrot.slane %v934_v29, 4  ;;  %v954_v35 = vsel %vm252_vm1, 0.0, %v953_v31  ;;  %v966_v36 = vsel %vm252_vm1, %v953_v31, %v942_v27 }
 0x3b5   : > { %v947_v37 = vrot.slane %v930_v32, 4  ;;  %v970_v38 = vperm.slane %v966_v36, %v1389_v16  ;;  %v971_v39 = vrot.slane %v954_v35, 4  ;;  %v952_v41 = vsel %vm252_vm1, 0.0, %v951_v33 }
 0x3b6   : > { %v950_v40 = vsel %vm252_vm1, 0.0, %v949_v34  ;;  %v955_v42 = vsel %vm252_vm1, %v949_v34, %v930_v32 }
 0x3b7   : > { %v960_v43 = vrot.slane %v950_v40, 4  ;;  %v959_v44 = vperm.slane %v955_v42, %v1389_v16  ;;  %v972_v45 = vsel %vm252_vm1, %v971_v39, %v952_v41  ;;  %v948_v46 = vsel %vm252_vm1, 0.0, %v947_v37  ;;  %v1086_v41 = vpop.permute.xlu1 %1085 }
 0x3b8   : > { %v976_v47 = vperm.slane %v972_v45, %v1389_v16  ;;  %v991_v48 = vrot.slane %v970_v38, 4  ;;  %v1243_v23 = vpop.eup %1242 }
 0x3b9   : > { %v961_v49 = vsel %vm252_vm1, %v960_v43, %v948_v46  ;;  %v979_v50 = vrot.slane %v959_v44, 4  ;;  %v1059_v24 = vmul.f32 32.0, %v1243_v23 }
 0x3ba   : > { %v965_v51 = vperm.slane %v961_v49, %v1389_v16  ;;  %v992_v52 = vsel %vm252_vm1, %v976_v47, %v991_v48  ;;  %v989_v8 = vrot.slane %v976_v47, 4 }
 0x3bb   : > { %v1000_v9 = vperm.slane %v992_v52, %v1405_v30  ;;  %v1060_v5 = vsub.f32 1.0, %v1059_v24 }
 0x3bc   : > { %v980_v10 = vsel %vm252_vm1, %v965_v51, %v979_v50  ;;  %v977_v11 = vrot.slane %v965_v51, 4  ;;  %v990_v53 = vsel %vm252_vm1, %v989_v8, %v970_v38 }
 0x3bd   : > { %v988_v54 = vperm.slane %v980_v10, %v1405_v30  ;;  %v1005_v55 = vrot.slane %v1000_v9, 4  ;;  %v996_v56 = vperm.slane %v990_v53, %v1405_v30  ;;  %v1061_v25 = vmul.f32 %v1243_v23, %v1060_v5 }
 0x3be   : > { %v978_v57 = vsel %vm252_vm1, %v977_v11, %v959_v44 }
 0x3bf   : > { %v1006_v59 = vsel %vm252_vm1, %v1005_v55, %v988_v54  ;;  %v984_v16 = vperm.slane %v978_v57, %v1405_v30  ;;  %v1001_v60 = vrot.slane %v996_v56, 4  ;;  %v1007_v1 = vrot.slane %v988_v54, 4  ;;  %v1026_v30 = vld [vmem:[#allocation2] sm:$0xff] }
 0x3c0   : > { %1014 = vrot.lane.b32.xlu0 %v1006_v59, %s1298_s18  ;;  %1049 = vmatpush.msra.mxu2 %v1026_v30  ;;  %v1062_v26 = vadd.f32 %v1243_v23, %v1061_v25 }
 0x3c1   : > { %v1003_v61 = vrot.slane %v984_v16, 4  ;;  %v1002_v62 = vsel %vm252_vm1, %v1001_v60, %v984_v16  ;;  %v1008_v2 = vsel %vm252_vm1, %v1000_v9, %v1007_v1 }
 0x3c3   : > { %v1004_v0 = vsel %vm252_vm1, %v996_v56, %v1003_v61  ;;  %vm1063_vm1 = vweird.f32 %v1243_v23 }
 0x3c4   : > { %1010 = vrot.lane.b32.xlu2 %v1004_v0, %s1299_s20  ;;  %v1064_v27 = vsel %vm1063_vm1, %v1243_v23, %v1062_v26 }
 0x3cc   : > { %1018 = vrot.lane.b32.xlu2 %v1008_v2, %s1300_s21 }
 0x41e   : > { %v1011_v12 = vpop.permute.xlu2 %1010 }
 0x41f   : > { %v1021_v13 = vsel %vm606_vm2, %v1002_v62, %v1011_v12 }
 0x426   : > { %v1019_v63 = vpop.permute.xlu2 %1018 }
 0x432   : > { %v1015_v58 = vpop.permute.xlu0 %1014 }
 0x433   : > { %v1023_v17 = vsel %vm1022_vm6, %v1021_v13, %v1015_v58 }
 0x434   : > { %v1025_v15 = vsel %vm1024_vm7, %v1023_v17, %v1019_v63 }
 0x435   : > { %1181 = vmatmul.msk.f32.vlgmr.msra.gmra.mxu2 %vm217_vm0, %v1025_v15 }
 0x4b8   : > { %v1051_v18 = vpop.f32.mrf.mxu2 }
 0x4b9   : > { %v1052_v19 = vadd.f32 %v1051_v18, %v1554_v14 }
 0x4bb   : > { %v1054_v20 = vadd.f32 %v1052_v19, %v1358_v4 }
 0x4bd   : > { %v1055_v21 = vsel %vm217_vm0, %v1054_v20, 0.0 }
 0x4be   : > { %1056 = vadd.xlane.f32.xlu2 %v1055_v21 }
 0x4d6   : > { %1089 = vrot.lane.b32.xlu2 %v1554_v14, %s1297_s17 }
 0x531   : > { %v1057_v28 = vpop.xlane.xlu2 %1056 }
 0x532   : > { %v1065_v29 = vmul.f32 %v1064_v27, %v1057_v28 }
 0x534   : > { %v1066_v31 = vsub.f32 %v1054_v20, %v1065_v29 }
 0x536   : > { %v1067_v32 = vmul.f32 %v1066_v31, %v1066_v31 }
 0x538   : > { %v1068_v4 = vsel %vm217_vm0, %v1067_v32, 0.0 }
 0x539   : > { %1069 = vadd.xlane.f32.xlu0 %v1068_v4  ;;  %v1090_v44 = vpop.permute.xlu2 %1089 }
 0x5ac   : > { %v1070_v33 = vpop.xlane.xlu0 %1069 }
 0x5ad   : > { %v1071_v34 = vmul.f32 %v1070_v33, %v1064_v27 }
 0x5af   : > { %v1072_v35 = vadd.f32 1e-05, %v1071_v34 }
 0x5b1   : > { %1244 = vrsqrt.f32 %v1072_v35  ;;  %vm1079_vm8 = vweird.f32 %v1072_v35 }
 0x5b7   : > { %v1245_v14 = vpop.eup %1244 }
 0x5b8   : > { %v1074_v36 = vmul.f32 %v1245_v14, %v1072_v35  ;;  %vm1080_vm2 = vweird.f32 %v1245_v14 }
 0x5b9   : > { %vm1081_vm9 = vmor %vm1079_vm8, %vm1080_vm2 }
 0x5ba   : > { %v1075_v37 = vmul.f32 %v1245_v14, %v1074_v36 }
 0x5bc   : > { %v1076_v38 = vmul.f32 0.5, %v1075_v37 }
 0x5be   : > { %v1077_v39 = vsub.f32 1.5, %v1076_v38 }
 0x5c0   : > { %v1078_v40 = vmul.f32 %v1245_v14, %v1077_v39 }
 0x5c2   : > { %v1082_v42 = vsel %vm1081_vm9, %v1245_v14, %v1078_v40 }
 0x5c3   : > { %v1083_v43 = vmul.f32 %v1082_v42, %v1066_v31 }
 0x5c5   : > { %v1088_v45 = vmul.f32 %v1086_v41, %v1083_v43 }
 0x5c7   : > { %v1092_v46 = vadd.f32 %v1090_v44, %v1088_v45 }
 0x5c9   : > { %1093 = vst.msk [vmem:[%s209_s25] sm:$0xff] %vm217_vm0, %v1092_v46 }
 0x5ca PF: > { %s15_s15 = sadd.s32 1, %s1286_s15  }
 0x5cb   : > { %p12_p7 = scmp.ge.s32.totalorder %s15_s15, 4  }
 0x5cd   :  { %14 = sbr.rel (!%p12_p7) target bundleno = 1 (0x1), region = 71 }
 0x5d2   :  { %1113 = vsyncpa [#allocation3], 1 }
 0x5d3   :  { %1115 = vsyncpa [#allocation3 + $0x1], 1 }

</bundles_post_ra>
